<compile_context>
chip_gen: v7x
topology: tpu7x:2x2x1
jax: 0.10.0
libtpu: 0.0.40
codegen_flags: <defaults>
</compile_context>

<pallas_src>
import functools

import jax
import jax.numpy as jnp
from jax.experimental import pallas as pl
from jax.experimental.pallas import tpu as pltpu


def _mse_partial_kernel(pred_ref, targ_ref, out_ref, *, tile_n, n_rows, mask_rows):
    """One grid step: squared error over a (tile_n, D) row slab -> (1, 1, D) partial sum."""
    p = pred_ref[...].astype(jnp.float32)
    t = targ_ref[...].astype(jnp.float32)
    d = p - t
    d2 = d * d

    if mask_rows:
        # Last block may read past row N; zero the out-of-range rows' contribution.
        i = pl.program_id(0)
        row = i * tile_n + jax.lax.broadcasted_iota(jnp.int32, (tile_n, 1), 0)
        d2 = jnp.where(row < n_rows, d2, 0.0)

    # Sum over the rows of this block: VPU adds across vregs down the sublane
    # axis + one sublane reduce per 128-lane group.  Lane-dense (1, D) result.
    partial = jnp.sum(d2, axis=0, keepdims=True)
    out_ref[...] = partial[None]  # (1, 1, D)


def base_measure_forward(pred, target, *, max_block_bytes=4 * 1024 * 1024):
    """Pallas equivalent of BaseMeasure.forward with an MSE criterion.

    pred, target: (B, T, C, H, W)  ->  scalar (float32)
    """
    if pred.ndim != 5 or target.ndim != 5:
        raise ValueError("BaseMeasure expects 5-D inputs!")
    if pred.shape != target.shape:
        raise ValueError("pred and target must have the same shape!")

    B, T, C, H, W = pred.shape
    N = B * T
    D = C * H * W

    pred2d = pred.reshape(N, D)
    targ2d = target.reshape(N, D)

    # Row-tile sizing: largest row-contiguous slab such that
    # 2 inputs x 2 pipeline buffers fit comfortably in the scoped VMEM budget.
    # Sized with 4 B/elem (conservative even for bf16 inputs).
    rows_budget = max(1, max_block_bytes // (D * 4))
    tile_n = min(N, max(8, rows_budget))
    if tile_n < N:
        tile_n = max(8, (tile_n // 8) * 8)  # sublane-aligned unless full-N block
    grid = pl.cdiv(N, tile_n)
    mask_rows = (N % tile_n) != 0

    kernel = functools.partial(
        _mse_partial_kernel, tile_n=tile_n, n_rows=N, mask_rows=mask_rows
    )

    partials = pl.pallas_call(
        kernel,
        out_shape=jax.ShapeDtypeStruct((grid, 1, D), jnp.float32),
        grid_spec=pltpu.PrefetchScalarGridSpec(
            num_scalar_prefetch=0,
            grid=(grid,),
            in_specs=[
                pl.BlockSpec((tile_n, D), lambda i: (i, 0)),
                pl.BlockSpec((tile_n, D), lambda i: (i, 0)),
            ],
            out_specs=pl.BlockSpec((1, 1, D), lambda i: (i, 0, 0)),
        ),
        compiler_params=pltpu.CompilerParams(
            dimension_semantics=("parallel",),
            vmem_limit_bytes=32 * 1024 * 1024,
        ),
    )(pred2d, targ2d)

    # sum over (C,H,W) per (b,t), then uniform mean over (B,T) == total / (B*T).
    return jnp.sum(partials) / jnp.float32(N)


def reshape_clamp(pred, target):
    """Plain-JAX equivalent of BaseMeasure.reshape_clamp (glue, not hot path)."""
    if pred.ndim != 5 or target.ndim != 5:
        raise ValueError("BaseMeasure expects 5-D inputs!")
    p = pred.reshape(-1, *pred.shape[2:])
    p = jnp.clip((p + 1.0) / 2.0, 0.0, 1.0)
    t = target.reshape(-1, *target.shape[2:])
    t = jnp.clip((t + 1.0) / 2.0, 0.0, 1.0)
    return p, t


def _ref_forward(pred, target):
    # Pure-JAX reference mirroring the PyTorch reduction order.
    return jnp.mean(
        jnp.mean(jnp.sum((pred - target) ** 2, axis=(4, 3, 2)), axis=1), axis=0
    )


if __name__ == "__main__":
    # Small 5-D video tensors (B, T, C, H, W).
    B, T, C, H, W = 2, 4, 3, 16, 16
    key = jax.random.PRNGKey(0)
    kp, kt, kp2, kt2 = jax.random.split(key, 4)

    pred = jax.random.normal(kp, (B, T, C, H, W), dtype=jnp.float32)
    target = jax.random.normal(kt, (B, T, C, H, W), dtype=jnp.float32)

    out = jax.block_until_ready(base_measure_forward(pred, target))
    ref = _ref_forward(pred, target)
    assert jnp.allclose(out, ref, rtol=1e-5, atol=1e-5), (out, ref)

    # Second case exercises the multi-block + masked-partial-last-block path
    # (N = 15 rows, tile_n forced to 8 via a tiny block-byte budget).
    B2, T2 = 3, 5
    pred2 = jax.random.normal(kp2, (B2, T2, C, H, W), dtype=jnp.float32)
    target2 = jax.random.normal(kt2, (B2, T2, C, H, W), dtype=jnp.float32)
    out2 = jax.block_until_ready(
        base_measure_forward(pred2, target2, max_block_bytes=8 * C * H * W * 4)
    )
    ref2 = _ref_forward(pred2, target2)
    assert jnp.allclose(out2, ref2, rtol=1e-5, atol=1e-5), (out2, ref2)

    # TODO(synk): `self.criterion` is abstract in BaseMeasure; elementwise
    # squared error (MSE) is used as the concrete criterion here.
    print("KERNEL_OK")
</pallas_src>

<mosaic_0001>
module attributes {stable_mosaic.version = 11 : i64} {
  func.func @_mse_partial_kernel(%arg0: i32, %arg1: memref<8x768xf32, #tpu.memory_space<vmem>>, %arg2: memref<8x768xf32, #tpu.memory_space<vmem>>, %arg3: memref<1x1x768xf32, #tpu.memory_space<vmem>>) attributes {dimension_semantics = [#tpu.dimension_semantics<parallel>], iteration_bounds = array<i64: 1>, scalar_prefetch = 0 : i64, scratch_operands = 0 : i64, tpu.core_type = #tpu.core_type<tc>, window_params = [{transform_indices = @transform_0, window_bounds = array<i64: 8, 768>}, {transform_indices = @transform_1, window_bounds = array<i64: 8, 768>}, {transform_indices = @transform_2, window_bounds = array<i64: 1, 1, 768>}]} {
    %c0 = arith.constant 0 : index
    %c0_0 = arith.constant 0 : index
    %0 = vector.load %arg1[%c0, %c0_0] : memref<8x768xf32, #tpu.memory_space<vmem>>, vector<8x768xf32>
    %c0_1 = arith.constant 0 : index
    %c0_2 = arith.constant 0 : index
    %1 = vector.load %arg2[%c0_1, %c0_2] : memref<8x768xf32, #tpu.memory_space<vmem>>, vector<8x768xf32>
    %2 = arith.subf %0, %1 : vector<8x768xf32>
    %3 = arith.mulf %2, %2 : vector<8x768xf32>
    %cst = arith.constant dense<0.000000e+00> : vector<768xf32>
    %4 = vector.multi_reduction <add>, %3, %cst [0] : vector<8x768xf32> to vector<768xf32>
    %5 = vector.shape_cast %4 : vector<768xf32> to vector<1x768xf32>
    %6 = vector.shape_cast %5 : vector<1x768xf32> to vector<1x1x768xf32>
    %c0_3 = arith.constant 0 : index
    %c0_4 = arith.constant 0 : index
    %c0_5 = arith.constant 0 : index
    %7 = vector.load %arg3[%c0_3, %c0_4, %c0_5] : memref<1x1x768xf32, #tpu.memory_space<vmem>>, vector<1x1x768xf32>
    tpu.vector_store %arg3[%c0_3, %c0_4, %c0_5], %6 {strides = array<i32>} : memref<1x1x768xf32, #tpu.memory_space<vmem>>, vector<1x1x768xf32>,
    return
  }
  func.func @transform_0(%arg0: i32) -> (i32, i32) {
    %c0_i32 = arith.constant 0 : i32
    %c0_i32_0 = arith.constant 0 : i32
    return %arg0, %c0_i32 : i32, i32
  }
  func.func @transform_1(%arg0: i32) -> (i32, i32) {
    %c0_i32 = arith.constant 0 : i32
    %c0_i32_0 = arith.constant 0 : i32
    return %arg0, %c0_i32 : i32, i32
  }
  func.func @transform_2(%arg0: i32) -> (i32, i32, i32) {
    %c0_i32 = arith.constant 0 : i32
    %c0_i32_0 = arith.constant 0 : i32
    %c0_i32_1 = arith.constant 0 : i32
    return %arg0, %c0_i32, %c0_i32_0 : i32, i32, i32
  }
}

</mosaic_0001>

<bundles_post_ra>
// kernel: tpu_custom_call.1
= control target key start
LH: loop header
LB: loop body
LE: loop exit
PB: predicated region body
PF: predicated region fallthrough
CT: control target
= control target key end

     0   :  { %7 = vsyncpa [#allocation3], 0  ;;  %s295_s0 = inlined_call_operand.hbm [shape: f32[8,768], index: 0, kind: input, shape index: {}]   ;;  %s296_s1 = inlined_call_operand.hbm [shape: f32[8,768], index: 1, kind: input, shape index: {}]   ;;  %s297_s2 = inlined_call_operand.hbm [shape: f32[1,1,768], index: 2, kind: output, shape index: {}]  }
   0x1   :  { %8 = vsyncpa [#allocation6], 0 }
   0x2   :  { %9 = vsyncpa [#allocation4], 0  ;;  %s240_s9 = smov [#allocation2]   ;;  %s241_s11 = smov [#allocation5]  }
   0x3   :  { %s16_s10 = sshll.u32 %s240_s9, 4  ;;  %s26_s12 = sshll.u32 %s241_s11, 4  ;;  %s17_s10 = int_to_ptr.vmem [resolvable:$true] %s16_s10  ;;  %s27_s12 = int_to_ptr.vmem [resolvable:$true] %s26_s12 }
   0x4   :  { %s168_s15 = scalar_lea.hbm %s295_s0, 768 }
   0x5   :  { %p169_p0 = scmp.ne.s32.totalorder %s295_s0, %s168_s15  ;;  %p172_p1 = scmp.lt.u32.totalorder %s168_s15, %s295_s0 }
   0x7   :  { %p174_p2 = pnand %p172_p1, %p169_p0 }
   0x9   :  { %177 = shalt.err (!%p174_p2)
}
   0xa   :  { %s178_s20 = scalar_lea.vmem %s17_s10, 768  ;;  %p183_p4 = scmp.lt.s32.totalorder %s17_s10, %s17_s10 }
   0xb   :  { %p179_p3 = scmp.ne.s32.totalorder %s17_s10, %s178_s20  ;;  %p184_p5 = scmp.lt.s32.totalorder %s178_s20, %s178_s20 }
   0xd   :  { %p185_p6 = por %p184_p5, %p183_p4 }
   0xf   :  { %p186_p7 = pnand %p185_p6, %p179_p3 }
  0x11   :  { %189 = shalt.err (!%p186_p7)
}
  0x12   :  { %19 = dma.hbm_to_vmem [thread:$0]  %s295_s0, 768, %s17_s10, [#allocation3]  }
  0x13   :  { %s190_s25 = scalar_lea.hbm %s296_s1, 768 }
  0x14   :  { %p191_p8 = scmp.ne.s32.totalorder %s296_s1, %s190_s25  ;;  %p194_p9 = scmp.lt.u32.totalorder %s190_s25, %s296_s1 }
  0x16   :  { %p196_p10 = pnand %p194_p9, %p191_p8 }
  0x18   :  { %199 = shalt.err (!%p196_p10)
}
  0x19   :  { %s200_s30 = scalar_lea.vmem %s27_s12, 768  ;;  %p205_p12 = scmp.lt.s32.totalorder %s27_s12, %s27_s12 }
  0x1a   :  { %p201_p11 = scmp.ne.s32.totalorder %s27_s12, %s200_s30  ;;  %p206_p13 = scmp.lt.s32.totalorder %s200_s30, %s200_s30 }
  0x1c   :  { %p207_p0 = por %p206_p13, %p205_p12 }
  0x1e   :  { %p208_p1 = pnand %p207_p0, %p201_p11 }
  0x20   :  { %211 = shalt.err (!%p208_p1)
}
  0x21   :  { %29 = dma.hbm_to_vmem [thread:$0]  %s296_s1, 768, %s27_s12, [#allocation6]  }
  0x22   :  { %234 = dma.done.wait [#allocation3], 768  }
  0x23   :  { %235 = vsyncadd [#allocation3], 4294966528 }
  0x24   :  { %236 = dma.done.wait [#allocation6], 768  }
  0x25   :  { %237 = vsyncadd [#allocation6], 4294966528  ;;  %v36_v0 = vld [vmem:[#allocation2] sm:$0xff]  ;;  %v37_v1 = vld [vmem:[#allocation2 + $0x8] sm:$0xff]  ;;  %v108_v30 = vlaneseq  ;;  %v242_v34 = vmov 1966171168  }
  0x26   :  { %v38_v2 = vld [vmem:[#allocation2 + $0x10] sm:$0xff]  ;;  %v39_v3 = vld [vmem:[#allocation2 + $0x18] sm:$0xff]  ;;  %v40_v4 = vld [vmem:[#allocation2 + $0x20] sm:$0xff]  ;;  %v106_v35 = vunpack.c.l.s4 %v242_v34  ;;  %s243_s1 = smov [#allocation7]  }
  0x27   :  { %v41_v5 = vld [vmem:[#allocation2 + $0x28] sm:$0xff]  ;;  %v42_v6 = vld [vmem:[#allocation5] sm:$0xff]  ;;  %v43_v7 = vld [vmem:[#allocation5 + $0x8] sm:$0xff]  ;;  %v109_v45 = vshrl.u32 %v108_v30, 7  ;;  %s154_s4 = sshll.u32 %s243_s1, 4  ;;  %vm145_vm0 = vcmp.lt.s32.totalorder %v108_v30, 768  ;;  %s155_s4 = int_to_ptr.vmem [resolvable:$true] %s154_s4 }
  0x28   :  { %v44_v8 = vld [vmem:[#allocation5 + $0x10] sm:$0xff]  ;;  %v45_v9 = vld [vmem:[#allocation5 + $0x18] sm:$0xff]  ;;  %v46_v10 = vld [vmem:[#allocation5 + $0x20] sm:$0xff]  ;;  %v48_v12 = vsub.f32 %v36_v0, %v42_v6  ;;  %v49_v13 = vsub.f32 %v37_v1, %v43_v7  ;;  %v107_v49 = vunpack.c.0.s8 %v106_v35  ;;  %s212_s5 = scalar_lea.vmem %s155_s4, 96  ;;  %p217_p3 = scmp.lt.s32.totalorder %s155_s4, %s155_s4 }
  0x29   :  { %v47_v11 = vld [vmem:[#allocation5 + $0x28] sm:$0xff]  ;;  %v50_v14 = vsub.f32 %v38_v2, %v44_v8  ;;  %v51_v15 = vsub.f32 %v39_v3, %v45_v9  ;;  %v52_v16 = vsub.f32 %v40_v4, %v46_v10  ;;  %p213_p2 = scmp.ne.s32.totalorder %s155_s4, %s212_s5  ;;  %p218_p4 = scmp.lt.s32.totalorder %s212_s5, %s212_s5 }
  0x2a   :  { %v53_v17 = vsub.f32 %v41_v5, %v47_v11  ;;  %v54_v18 = vmul.f32 %v48_v12, %v48_v12  ;;  %v55_v19 = vmul.f32 %v49_v13, %v49_v13  ;;  %v110_v62 = vsub.s32 %v107_v49, %v109_v45 }
  0x2b   :  { %v56_v20 = vmul.f32 %v50_v14, %v50_v14  ;;  %v57_v21 = vmul.f32 %v51_v15, %v51_v15  ;;  %v58_v22 = vmul.f32 %v52_v16, %v52_v16  ;;  %p219_p5 = por %p218_p4, %p217_p3 }
  0x2c   :  { %v59_v23 = vmul.f32 %v53_v17, %v53_v17  ;;  %v60_v24 = vrot.slane %v54_v18, 4  ;;  %v66_v25 = vrot.slane %v55_v19, 4 }
  0x2d   :  { %v72_v26 = vrot.slane %v56_v20, 4  ;;  %v78_v27 = vrot.slane %v57_v21, 4  ;;  %v84_v28 = vrot.slane %v58_v22, 4  ;;  %p220_p6 = pnand %p219_p5, %p213_p2 }
  0x2e   :  { %v90_v29 = vrot.slane %v59_v23, 4  ;;  %v61_v31 = vadd.f32 %v60_v24, %v54_v18  ;;  %v67_v32 = vadd.f32 %v66_v25, %v55_v19 }
  0x2f   :  { %v73_v33 = vadd.f32 %v72_v26, %v56_v20  ;;  %v79_v36 = vadd.f32 %v78_v27, %v57_v21  ;;  %v85_v37 = vadd.f32 %v84_v28, %v58_v22 }
  0x30   :  { %v91_v38 = vadd.f32 %v90_v29, %v59_v23  ;;  %v62_v39 = vrot.slane %v61_v31, 2  ;;  %v68_v40 = vrot.slane %v67_v32, 2 }
  0x31   :  { %v74_v41 = vrot.slane %v73_v33, 2  ;;  %v80_v42 = vrot.slane %v79_v36, 2  ;;  %v86_v43 = vrot.slane %v85_v37, 2 }
  0x32   :  { %v92_v44 = vrot.slane %v91_v38, 2  ;;  %v63_v46 = vadd.f32 %v62_v39, %v61_v31  ;;  %v69_v47 = vadd.f32 %v68_v40, %v67_v32 }
  0x33   :  { %v75_v48 = vadd.f32 %v74_v41, %v73_v33  ;;  %v81_v50 = vadd.f32 %v80_v42, %v79_v36  ;;  %v87_v51 = vadd.f32 %v86_v43, %v85_v37 }
  0x34   :  { %v93_v52 = vadd.f32 %v92_v44, %v91_v38  ;;  %v64_v53 = vrot.slane %v63_v46, 1  ;;  %v70_v54 = vrot.slane %v69_v47, 1 }
  0x35   :  { %v76_v55 = vrot.slane %v75_v48, 1  ;;  %v82_v56 = vrot.slane %v81_v50, 1  ;;  %v88_v57 = vrot.slane %v87_v51, 1 }
  0x36   :  { %v94_v58 = vrot.slane %v93_v52, 1  ;;  %v65_v59 = vadd.f32 %v64_v53, %v63_v46  ;;  %v71_v60 = vadd.f32 %v70_v54, %v69_v47 }
  0x37   :  { %v77_v61 = vadd.f32 %v76_v55, %v75_v48  ;;  %v83_v63 = vadd.f32 %v82_v56, %v81_v50  ;;  %v89_v0 = vadd.f32 %v88_v57, %v87_v51 }
  0x38   :  { %v95_v1 = vadd.f32 %v94_v58, %v93_v52  ;;  %v102_v2 = vcombine.low %v65_v59, %v71_v60 }
  0x39   :  { %v103_v3 = vcombine.low %v77_v61, %v83_v63 }
  0x3a   :  { %v104_v4 = vcombine.low %v89_v0, %v95_v1  ;;  %v111_v5 = vrot.slane %v102_v2, %v110_v62 }
  0x3b   :  { %v118_v6 = vrot.slane %v103_v3, %v110_v62 }
  0x3c   :  { %v125_v7 = vrot.slane %v104_v4, %v110_v62 }
  0x3d   :  { %v126_v8 = vcombine.low %v111_v5, %v118_v6 }
  0x3e   :  { %v140_v9 = vrot.slane %v125_v7, %v110_v62 }
  0x3f   :  { %v133_v10 = vrot.slane %v126_v8, %v110_v62 }
  0x41   :  { %v141_v11 = vcombine.low %v133_v10, %v140_v9 }
  0x43   :  { %147 = vst.msk [vmem:[#allocation7] sm:$0x3f] %vm145_vm0, %v141_v11 }
  0x44   :  { %223 = shalt.err (!%p220_p6)
}
  0x45   :  { %s224_s8 = scalar_lea.hbm %s297_s2, 96 }
  0x46   :  { %p225_p7 = scmp.ne.s32.totalorder %s297_s2, %s224_s8  ;;  %p228_p8 = scmp.lt.u32.totalorder %s224_s8, %s297_s2 }
  0x48   :  { %p230_p9 = pnand %p228_p8, %p225_p7 }
  0x4a   :  { %233 = shalt.err (!%p230_p9)
}
  0x4b   :  { %157 = dma.vmem_to_hbm [thread:$0]  %s155_s4, 96, %s297_s2, [#allocation4]  }
  0x4c   :  { %238 = dma.done.wait [#allocation4], 96  }
  0x4d   :  { %239 = vsyncadd [#allocation4], 4294967200 }
  0x4e   :  { %161 = vsyncpa [#allocation3], 1 }
  0x4f   :  { %162 = vsyncpa [#allocation6], 1 }
  0x50   :  { %163 = vsyncpa [#allocation4], 1 }

</bundles_post_ra>
